<compile_context>
chip_gen: v6e
topology: v6e:2x2x1
jax: 0.10.0
libtpu: 0.0.40
codegen_flags: <defaults>
</compile_context>

<pallas_src>
import functools

import jax
import jax.numpy as jnp
from jax.experimental import pallas as pl
from jax.experimental.pallas import tpu as pltpu


# ----------------------------------------------------------------------------
# Helpers: per-chip VMEM sizing and lane-tile selection
# ----------------------------------------------------------------------------
def _round_up(v, m):
    return (v + m - 1) // m * m


def _vmem_config():
    """Return (lane-tile VMEM budget bytes, scoped vmem_limit_bytes) per chip."""
    try:
        cap = int(getattr(pltpu.get_tpu_info(), "vmem_capacity_bytes",
                          64 * 1024 * 1024))
    except Exception:  # conservative fallback if the query is unavailable
        cap = 64 * 1024 * 1024
    # 128 MiB chips (v5e/v6e): ~20 MiB tile budget, 64 MiB scoped limit.
    # 64 MiB per-TC chips (v7x): ~10 MiB tile budget, 32 MiB scoped limit.
    budget = max(4 * 1024 * 1024, min(cap // 6, 20 * 1024 * 1024))
    limit = max(32 * 1024 * 1024, min(cap // 2, 64 * 1024 * 1024))
    return budget, limit


def _pick_lane_tile(total, bytes_per_lane, budget_bytes):
    """Largest lane tile (multiple of 128, or the full extent) whose
    double-buffered streams fit within `budget_bytes`."""
    max_tile = max(128, (budget_bytes // max(bytes_per_lane, 1)) // 128 * 128)
    return total if total <= max_tile else max_tile


# ----------------------------------------------------------------------------
# Kernel 1: attention2d + expert aggregation, gridded over (B, HWy tiles)
# ----------------------------------------------------------------------------
def _attention_aggregate_kernel(y_ref, w1t_ref, b1_ref, w2t_ref, b2_ref,
                                wflat_ref, bexp_ref, agg_w_ref, agg_b_ref,
                                pooled_acc, *, hwy_total, tile_hwy):
    """Running-sum global pool over HWy tiles; on the last tile run the tiny
    MLP + softmax and mix the K experts.

    y_ref     : (1, C_att, Thwy)        one HWy tile of one sample (lane-dense)
    w1t_ref   : (C_att, K)              fc1 weight (pre-transposed)
    b1_ref    : (1, K)
    w2t_ref   : (K, K)                  fc2 weight (pre-transposed)
    b2_ref    : (1, K)
    wflat_ref : (K, C_out*C_in*ks*ks)   the K expert conv kernels, flattened
    bexp_ref  : (K, C_out)              the K expert biases
    agg_w_ref : (1, 1, C_out*C_in*ks*ks) per-sample aggregated weight (output)
    agg_b_ref : (1, 1, C_out)            per-sample aggregated bias   (output)
    pooled_acc: (1, C_att) VMEM scratch  running spatial sum
    """
    t = pl.program_id(1)

    @pl.when(t == 0)
    def _():
        pooled_acc[...] = jnp.zeros_like(pooled_acc)

    y = y_ref[...].astype(jnp.float32)                       # (1, C_att, Thwy)
    if hwy_total % tile_hwy != 0:
        # Mask the partial tail HWy block so garbage lanes don't pollute the sum.
        lane = jax.lax.broadcasted_iota(jnp.int32, y.shape, dimension=2)
        y = jnp.where(lane < (hwy_total - t * tile_hwy), y, 0.0)
    pooled_acc[...] += jnp.sum(y, axis=-1)                    # (1, C_att)

    @pl.when(t == pl.num_programs(1) - 1)
    def _():
        pooled = pooled_acc[...] * (1.0 / float(hwy_total))   # mean pool (1, C_att)
        # Tiny MLP (the two 1x1 convs of attention2d), all in f32.
        z1 = jnp.dot(pooled, w1t_ref[...].astype(jnp.float32),
                     preferred_element_type=jnp.float32) + b1_ref[...].astype(jnp.float32)
        z1 = jnp.maximum(z1, 0.0)                              # relu
        z2 = jnp.dot(z1, w2t_ref[...].astype(jnp.float32),
                     preferred_element_type=jnp.float32) + b2_ref[...].astype(jnp.float32)
        # Softmax over the K experts (lane axis), no temperature (matches ref).
        z2 = z2 - jnp.max(z2, axis=-1, keepdims=True)
        e = jnp.exp(z2)
        att = e / jnp.sum(e, axis=-1, keepdims=True)           # (1, K)
        # Mix experts: (1, K) @ (K, ...) — tiny matmuls, everything in VMEM.
        # TODO(synk): if C_out*C_in*ks*ks grows very large, tile this mix over
        # the lane axis instead of one block.
        agg_w_ref[0] = jnp.dot(att, wflat_ref[...].astype(jnp.float32),
                               preferred_element_type=jnp.float32).astype(agg_w_ref.dtype)
        agg_b_ref[0] = jnp.dot(att, bexp_ref[...].astype(jnp.float32),
                               preferred_element_type=jnp.float32).astype(agg_b_ref.dtype)


# ----------------------------------------------------------------------------
# Kernel 2: per-sample pointwise conv, H*W on the lane axis (MXU path only)
# ----------------------------------------------------------------------------
def _dyn_pointwise_conv_kernel(x_ref, w_ref, b_ref, o_ref):
    """o[b] = W_b @ x[b] + b_b for one (Tb-samples, HW tile) block.

    x_ref: (Tb, C_in,  Thw)   lane-dense input tile
    w_ref: (Tb, C_out, C_in)  aggregated per-sample weights
    b_ref: (Tb, C_out, 1)     aggregated per-sample biases
    o_ref: (Tb, C_out, Thw)   lane-dense output tile (unmasked vst stores)
    """
    tb = x_ref.shape[0]
    for i in range(tb):  # Tb is small and static; short unrolled loop
        # Single MXU matmul with f32 accumulation.  Even for tiny channel
        # counts this stays mem-bound (no vst churn from an unrolled VPU
        # accumulator), per the perf review.
        acc = jnp.dot(w_ref[i].astype(jnp.float32), x_ref[i].astype(jnp.float32),
                      preferred_element_type=jnp.float32)
        o_ref[i] = (acc + b_ref[i].astype(jnp.float32)).astype(o_ref.dtype)


# ----------------------------------------------------------------------------
# Wrapper
# ----------------------------------------------------------------------------
def dynamic_conv2d(x, y, weight, bias, fc1_w, fc1_b, fc2_w, fc2_b,
                   *, stride=1, padding=0, dilation=1, groups=1):
    """Forward pass of Dynamic_conv2d with kernel_size=1.

    x     : (B, C_in, H, W)                    conv input  (NCHW)
    y     : (B, C_in, Hy, Wy)                  attention input (NCHW)
    weight: (K, C_out, C_in//groups, ks, ks)   expert conv weights
    bias  : (K, C_out) or None                 expert biases
    fc1_w : (K, C_in, 1, 1), fc1_b: (K,)       attention fc1 (1x1 conv)
    fc2_w : (K, K,   1, 1), fc2_b: (K,)        attention fc2 (1x1 conv)
    """
    B, C_in, H, W = x.shape
    K, C_out, C_in_g, ks, ks2 = weight.shape
    assert y.shape[0] == B and y.shape[1] == C_in
    # TODO(synk): only the pointwise (kernel_size=1, stride=1, padding=0,
    # dilation=1, groups=1) F.conv2d path is implemented as a Pallas kernel.
    if not (ks == 1 and ks2 == 1 and stride == 1 and padding == 0
            and dilation == 1 and groups == 1):
        raise NotImplementedError(
            "Pallas path covers kernel_size=1, stride=1, padding=0, dilation=1, groups=1.")

    HW = H * W
    HWy = y.shape[2] * y.shape[3]
    CW = C_out * C_in_g * ks * ks
    budget, vmem_limit = _vmem_config()

    # ---- Stage 1: fused (gridded) attention + expert aggregation -----------
    w1t = fc1_w.reshape(K, C_in).T                       # (C_in, K)
    b1 = fc1_b.reshape(1, K)
    w2t = fc2_w.reshape(K, K).T                          # (K, K)
    b2 = fc2_b.reshape(1, K)
    weight_flat = weight.reshape(K, CW)
    bias_mat = bias if bias is not None else jnp.zeros((K, C_out), weight.dtype)

    y_flat = y.reshape(B, C_in, HWy)                     # free reshape of NCHW
    thwy = _pick_lane_tile(HWy, 2 * C_in * y.dtype.itemsize, budget)
    n_hwy = pl.cdiv(HWy, thwy)

    att_kernel = functools.partial(_attention_aggregate_kernel,
                                   hwy_total=HWy, tile_hwy=thwy)

    agg_w_flat, agg_b = pl.pallas_call(
        att_kernel,
        out_shape=(jax.ShapeDtypeStruct((B, 1, CW), jnp.float32),
                   jax.ShapeDtypeStruct((B, 1, C_out), jnp.float32)),
        grid_spec=pltpu.PrefetchScalarGridSpec(
            num_scalar_prefetch=0,
            grid=(B, n_hwy),
            in_specs=[
                pl.BlockSpec((1, C_in, thwy), lambda b, t: (b, 0, t)),
                pl.BlockSpec((C_in, K), lambda b, t: (0, 0)),
                pl.BlockSpec((1, K), lambda b, t: (0, 0)),
                pl.BlockSpec((K, K), lambda b, t: (0, 0)),
                pl.BlockSpec((1, K), lambda b, t: (0, 0)),
                pl.BlockSpec((K, CW), lambda b, t: (0, 0)),
                pl.BlockSpec((K, C_out), lambda b, t: (0, 0)),
            ],
            out_specs=(
                pl.BlockSpec((1, 1, CW), lambda b, t: (b, 0, 0)),
                pl.BlockSpec((1, 1, C_out), lambda b, t: (b, 0, 0)),
            ),
            scratch_shapes=[pltpu.VMEM((1, C_in), jnp.float32)],
        ),
        compiler_params=pltpu.CompilerParams(
            dimension_semantics=("parallel", "arbitrary"),
            vmem_limit_bytes=vmem_limit,
        ),
        cost_estimate=pl.CostEstimate(
            flops=int(B * (HWy * C_in + 2 * K * (C_in + K + CW + C_out))),
            transcendentals=int(B * K),
            bytes_accessed=int(y.dtype.itemsize * B * C_in * HWy
                               + 4 * (K * CW + B * CW + K * C_out + B * C_out)),
        ),
    )(y_flat, w1t, b1, w2t, b2, weight_flat, bias_mat)

    agg_w = agg_w_flat.reshape(B, C_out, C_in_g)         # ks == 1
    agg_b3 = agg_b.reshape(B, C_out, 1)

    # ---- Stage 2: per-sample pointwise conv, H*W on the lane axis ----------
    x_flat = x.reshape(B, C_in, HW)                      # NCHW -> free reshape
    itemsize = x.dtype.itemsize
    tile_hw = _pick_lane_tile(HW, 2 * (C_in + C_out) * itemsize, budget)

    # v7x has 2 TensorCores: for B == 1 force at least 2 lane tiles so the
    # parallel grid can be sharded across both cores.
    if B == 1 and tile_hw >= HW and HW >= 256:
        tile_hw = max(128, _round_up((HW + 1) // 2, 128))

    n_hw = pl.cdiv(HW, tile_hw)

    # Batch blocking: when a grid step moves only a few KB, fuse several
    # samples per step to amortize per-step pipeline overhead and issue
    # HBM-efficient DMA sizes, while keeping >= 2 parallel steps for megacore.
    tb = 1
    step_bytes = tile_hw * (C_in + C_out) * itemsize
    if n_hw == 1 and B > 2 and step_bytes < (1 << 20):
        tb_want = min(B // 2, max(1, (1 << 20) // max(step_bytes, 1)))
        for d in range(tb_want, 0, -1):
            if B % d == 0:                               # exact blocks, no tail
                tb = d
                break

    out_flat = pl.pallas_call(
        _dyn_pointwise_conv_kernel,
        out_shape=jax.ShapeDtypeStruct((B, C_out, HW), x.dtype),
        grid_spec=pltpu.PrefetchScalarGridSpec(
            num_scalar_prefetch=0,
            grid=(B // tb, n_hw),
            in_specs=[
                pl.BlockSpec((tb, C_in, tile_hw), lambda b, t: (b, 0, t)),
                pl.BlockSpec((tb, C_out, C_in_g), lambda b, t: (b, 0, 0)),
                pl.BlockSpec((tb, C_out, 1), lambda b, t: (b, 0, 0)),
            ],
            out_specs=pl.BlockSpec((tb, C_out, tile_hw), lambda b, t: (b, 0, t)),
        ),
        compiler_params=pltpu.CompilerParams(
            dimension_semantics=("parallel", "parallel"),
            vmem_limit_bytes=vmem_limit,
        ),
        cost_estimate=pl.CostEstimate(
            flops=2 * B * HW * C_in * C_out,
            transcendentals=0,
            bytes_accessed=int(itemsize * (B * C_in * HW + B * C_out * HW)
                               + 4 * (B * C_out * C_in_g + B * C_out)),
        ),
    )(x_flat, agg_w, agg_b3)

    return out_flat.reshape(B, C_out, H, W)


if __name__ == "__main__":
    key = jax.random.PRNGKey(0)
    ks = jax.random.split(key, 8)

    batch, in_planes, out_planes, spatial, K = 2, 4, 8, 16, 3

    x = jax.random.normal(ks[0], (batch, in_planes, spatial, spatial), jnp.float32)
    y = jax.random.normal(ks[1], (batch, in_planes, spatial, spatial), jnp.float32)

    bound = 1.0 / (in_planes ** 0.5)
    weight = jax.random.uniform(ks[2], (K, out_planes, in_planes, 1, 1),
                                minval=-bound, maxval=bound, dtype=jnp.float32)
    bias = jax.random.uniform(ks[3], (K, out_planes),
                              minval=-bound, maxval=bound, dtype=jnp.float32)
    fc1_w = jax.random.uniform(ks[4], (K, in_planes, 1, 1),
                               minval=-bound, maxval=bound, dtype=jnp.float32)
    fc1_b = jax.random.uniform(ks[5], (K,), minval=-bound, maxval=bound, dtype=jnp.float32)
    bound2 = 1.0 / (K ** 0.5)
    fc2_w = jax.random.uniform(ks[6], (K, K, 1, 1),
                               minval=-bound2, maxval=bound2, dtype=jnp.float32)
    fc2_b = jax.random.uniform(ks[7], (K,), minval=-bound2, maxval=bound2, dtype=jnp.float32)

    out = dynamic_conv2d(x, y, weight, bias, fc1_w, fc1_b, fc2_w, fc2_b)
    jax.block_until_ready(out)

    # Pure-JAX reference mirroring the PyTorch forward exactly (kernel_size=1).
    pooled = jnp.mean(y, axis=(2, 3))                                      # (B, C_in)
    z1 = jnp.maximum(pooled @ fc1_w.reshape(K, in_planes).T + fc1_b, 0.0)
    z2 = z1 @ fc2_w.reshape(K, K).T + fc2_b
    att = jax.nn.softmax(z2, axis=1)                                       # (B, K)
    agg_w_ref = jnp.einsum("bk,koc->boc", att, weight.reshape(K, out_planes, in_planes))
    agg_b_ref = jnp.einsum("bk,ko->bo", att, bias)
    ref = jnp.einsum("boc,bchw->bohw", agg_w_ref, x) + agg_b_ref[:, :, None, None]

    assert out.shape == (batch, out_planes, spatial, spatial)
    assert jnp.allclose(out, ref, atol=1e-4, rtol=1e-4), \
        float(jnp.max(jnp.abs(out - ref)))

    print("KERNEL_OK")
</pallas_src>

<mosaic_0001>
module attributes {stable_mosaic.version = 11 : i64} {
  func.func @_attention_aggregate_kernel(%arg0: i32, %arg1: i32, %arg2: memref<1x4x256xf32, #tpu.memory_space<vmem>>, %arg3: memref<4x3xf32, #tpu.memory_space<vmem>>, %arg4: memref<1x3xf32, #tpu.memory_space<vmem>>, %arg5: memref<3x3xf32, #tpu.memory_space<vmem>>, %arg6: memref<1x3xf32, #tpu.memory_space<vmem>>, %arg7: memref<3x32xf32, #tpu.memory_space<vmem>>, %arg8: memref<3x8xf32, #tpu.memory_space<vmem>>, %arg9: memref<1x1x32xf32, #tpu.memory_space<vmem>>, %arg10: memref<1x1x8xf32, #tpu.memory_space<vmem>>, %arg11: memref<1x4xf32, #tpu.memory_space<vmem>>) attributes {dimension_semantics = [#tpu.dimension_semantics<parallel>, #tpu.dimension_semantics<arbitrary>], iteration_bounds = array<i64: 2, 1>, scalar_prefetch = 0 : i64, scratch_operands = 1 : i64, tpu.core_type = #tpu.core_type<tc>, window_params = [{transform_indices = @transform_0, window_bounds = array<i64: 1, 4, 256>}, {pipeline_mode = #tpu.pipeline_mode<synchronous>, transform_indices = @transform_1, window_bounds = array<i64: 4, 3>}, {pipeline_mode = #tpu.pipeline_mode<synchronous>, transform_indices = @transform_2, window_bounds = array<i64: 1, 3>}, {pipeline_mode = #tpu.pipeline_mode<synchronous>, transform_indices = @transform_3, window_bounds = array<i64: 3, 3>}, {pipeline_mode = #tpu.pipeline_mode<synchronous>, transform_indices = @transform_4, window_bounds = array<i64: 1, 3>}, {pipeline_mode = #tpu.pipeline_mode<synchronous>, transform_indices = @transform_5, window_bounds = array<i64: 3, 32>}, {pipeline_mode = #tpu.pipeline_mode<synchronous>, transform_indices = @transform_6, window_bounds = array<i64: 3, 8>}, {transform_indices = @transform_7, window_bounds = array<i64: 1, 1, 32>}, {transform_indices = @transform_8, window_bounds = array<i64: 1, 1, 8>}]} {
    %c0_i32 = arith.constant 0 : i32
    %0 = arith.cmpi eq, %arg1, %c0_i32 : i32
    %1 = arith.extui %0 : i1 to i32
    %c0_i32_0 = arith.constant 0 : i32
    %2 = arith.cmpi ne, %1, %c0_i32_0 : i32
    scf.if %2 {
      %cst_9 = arith.constant 0.000000e+00 : f32
      %11 = vector.broadcast %cst_9 : f32 to vector<1x4xf32>
      %c0_10 = arith.constant 0 : index
      %c0_11 = arith.constant 0 : index
      %12 = vector.load %arg11[%c0_10, %c0_11] : memref<1x4xf32, #tpu.memory_space<vmem>>, vector<1x4xf32>
      tpu.vector_store %arg11[%c0_10, %c0_11], %11 {strides = array<i32>} : memref<1x4xf32, #tpu.memory_space<vmem>>, vector<1x4xf32>,
    } else {
    }
    %c0 = arith.constant 0 : index
    %c0_1 = arith.constant 0 : index
    %c0_2 = arith.constant 0 : index
    %3 = vector.load %arg2[%c0, %c0_1, %c0_2] : memref<1x4x256xf32, #tpu.memory_space<vmem>>, vector<1x4x256xf32>
    %c0_3 = arith.constant 0 : index
    %c0_4 = arith.constant 0 : index
    %4 = vector.load %arg11[%c0_3, %c0_4] : memref<1x4xf32, #tpu.memory_space<vmem>>, vector<1x4xf32>
    %cst = arith.constant dense<0.000000e+00> : vector<1x4xf32>
    %5 = vector.multi_reduction <add>, %3, %cst [2] : vector<1x4x256xf32> to vector<1x4xf32>
    %6 = arith.addf %4, %5 : vector<1x4xf32>
    %c0_5 = arith.constant 0 : index
    %c0_6 = arith.constant 0 : index
    %7 = vector.load %arg11[%c0_5, %c0_6] : memref<1x4xf32, #tpu.memory_space<vmem>>, vector<1x4xf32>
    tpu.vector_store %arg11[%c0_5, %c0_6], %6 {strides = array<i32>} : memref<1x4xf32, #tpu.memory_space<vmem>>, vector<1x4xf32>,
    %c0_i32_7 = arith.constant 0 : i32
    %8 = arith.cmpi eq, %arg1, %c0_i32_7 : i32
    %9 = arith.extui %8 : i1 to i32
    %c0_i32_8 = arith.constant 0 : i32
    %10 = arith.cmpi ne, %9, %c0_i32_8 : i32
    scf.if %10 {
      %c0_9 = arith.constant 0 : index
      %c0_10 = arith.constant 0 : index
      %11 = vector.load %arg11[%c0_9, %c0_10] : memref<1x4xf32, #tpu.memory_space<vmem>>, vector<1x4xf32>
      %cst_11 = arith.constant 3.906250e-03 : f32
      %12 = vector.broadcast %cst_11 : f32 to vector<1x4xf32>
      %13 = arith.mulf %11, %12 : vector<1x4xf32>
      %c0_12 = arith.constant 0 : index
      %c0_13 = arith.constant 0 : index
      %14 = vector.load %arg3[%c0_12, %c0_13] : memref<4x3xf32, #tpu.memory_space<vmem>>, vector<4x3xf32>
      %cst_14 = arith.constant dense<0.000000e+00> : vector<1x3xf32>
      %15 = tpu.matmul %13, %14, %cst_14 {dimension_numbers = #tpu.dot_dimension_numbers<[1], [0], [0], [1], [0, 0, 1, 1], [], []>} : vector<1x4xf32>, vector<4x3xf32>, vector<1x3xf32> -> vector<1x3xf32>
      %c0_15 = arith.constant 0 : index
      %c0_16 = arith.constant 0 : index
      %16 = vector.load %arg4[%c0_15, %c0_16] : memref<1x3xf32, #tpu.memory_space<vmem>>, vector<1x3xf32>
      %17 = arith.addf %15, %16 : vector<1x3xf32>
      %cst_17 = arith.constant 0.000000e+00 : f32
      %18 = vector.broadcast %cst_17 : f32 to vector<1x3xf32>
      %19 = arith.maximumf %17, %18 : vector<1x3xf32>
      %c0_18 = arith.constant 0 : index
      %c0_19 = arith.constant 0 : index
      %20 = vector.load %arg5[%c0_18, %c0_19] : memref<3x3xf32, #tpu.memory_space<vmem>>, vector<3x3xf32>
      %cst_20 = arith.constant dense<0.000000e+00> : vector<1x3xf32>
      %21 = tpu.matmul %19, %20, %cst_20 {dimension_numbers = #tpu.dot_dimension_numbers<[1], [0], [0], [1], [0, 0, 1, 1], [], []>} : vector<1x3xf32>, vector<3x3xf32>, vector<1x3xf32> -> vector<1x3xf32>
      %c0_21 = arith.constant 0 : index
      %c0_22 = arith.constant 0 : index
      %22 = vector.load %arg6[%c0_21, %c0_22] : memref<1x3xf32, #tpu.memory_space<vmem>>, vector<1x3xf32>
      %23 = arith.addf %21, %22 : vector<1x3xf32>
      %cst_23 = arith.constant dense<0xFF800000> : vector<1xf32>
      %24 = vector.multi_reduction <maximumf>, %23, %cst_23 [1] : vector<1x3xf32> to vector<1xf32>
      %25 = vector.shape_cast %24 : vector<1xf32> to vector<1x1xf32>
      %26 = vector.broadcast %25 : vector<1x1xf32> to vector<1x3xf32>
      %27 = arith.subf %23, %26 : vector<1x3xf32>
      %28 = math.exp %27 : vector<1x3xf32>
      %cst_24 = arith.constant dense<0.000000e+00> : vector<1xf32>
      %29 = vector.multi_reduction <add>, %28, %cst_24 [1] : vector<1x3xf32> to vector<1xf32>
      %30 = vector.shape_cast %29 : vector<1xf32> to vector<1x1xf32>
      %31 = vector.broadcast %30 : vector<1x1xf32> to vector<1x3xf32>
      %32 = arith.divf %28, %31 : vector<1x3xf32>
      %c0_25 = arith.constant 0 : index
      %c0_26 = arith.constant 0 : index
      %33 = vector.load %arg7[%c0_25, %c0_26] : memref<3x32xf32, #tpu.memory_space<vmem>>, vector<3x32xf32>
      %cst_27 = arith.constant dense<0.000000e+00> : vector<1x32xf32>
      %34 = tpu.matmul %32, %33, %cst_27 {dimension_numbers = #tpu.dot_dimension_numbers<[1], [0], [0], [1], [0, 0, 1, 1], [], []>} : vector<1x3xf32>, vector<3x32xf32>, vector<1x32xf32> -> vector<1x32xf32>
      %c0_28 = arith.constant 0 : index
      %c0_29 = arith.constant 0 : index
      %c0_30 = arith.constant 0 : index
      %35 = vector.load %arg9[%c0_28, %c0_29, %c0_30] : memref<1x1x32xf32, #tpu.memory_space<vmem>>, vector<1x1x32xf32>
      %36 = vector.shape_cast %35 : vector<1x1x32xf32> to vector<1x32xf32>
      %37 = vector.shape_cast %34 : vector<1x32xf32> to vector<1x1x32xf32>
      tpu.vector_store %arg9[%c0_28, %c0_29, %c0_30], %37 {strides = array<i32>} : memref<1x1x32xf32, #tpu.memory_space<vmem>>, vector<1x1x32xf32>,
      %c0_31 = arith.constant 0 : index
      %c0_32 = arith.constant 0 : index
      %38 = vector.load %arg8[%c0_31, %c0_32] : memref<3x8xf32, #tpu.memory_space<vmem>>, vector<3x8xf32>
      %cst_33 = arith.constant dense<0.000000e+00> : vector<1x8xf32>
      %39 = tpu.matmul %32, %38, %cst_33 {dimension_numbers = #tpu.dot_dimension_numbers<[1], [0], [0], [1], [0, 0, 1, 1], [], []>} : vector<1x3xf32>, vector<3x8xf32>, vector<1x8xf32> -> vector<1x8xf32>
      %c0_34 = arith.constant 0 : index
      %c0_35 = arith.constant 0 : index
      %c0_36 = arith.constant 0 : index
      %40 = vector.load %arg10[%c0_34, %c0_35, %c0_36] : memref<1x1x8xf32, #tpu.memory_space<vmem>>, vector<1x1x8xf32>
      %41 = vector.shape_cast %40 : vector<1x1x8xf32> to vector<1x8xf32>
      %42 = vector.shape_cast %39 : vector<1x8xf32> to vector<1x1x8xf32>
      tpu.vector_store %arg10[%c0_34, %c0_35, %c0_36], %42 {strides = array<i32>} : memref<1x1x8xf32, #tpu.memory_space<vmem>>, vector<1x1x8xf32>,
    } else {
    }
    return
  }
  func.func @transform_0(%arg0: i32, %arg1: i32) -> (i32, i32, i32) {
    %c0_i32 = arith.constant 0 : i32
    %c0_i32_0 = arith.constant 0 : i32
    return %arg0, %c0_i32, %arg1 : i32, i32, i32
  }
  func.func @transform_1(%arg0: i32, %arg1: i32) -> (i32, i32) {
    %c0_i32 = arith.constant 0 : i32
    %c0_i32_0 = arith.constant 0 : i32
    %c0_i32_1 = arith.constant 0 : i32
    return %c0_i32, %c0_i32_0 : i32, i32
  }
  func.func @transform_2(%arg0: i32, %arg1: i32) -> (i32, i32) {
    %c0_i32 = arith.constant 0 : i32
    %c0_i32_0 = arith.constant 0 : i32
    %c0_i32_1 = arith.constant 0 : i32
    return %c0_i32, %c0_i32_0 : i32, i32
  }
  func.func @transform_3(%arg0: i32, %arg1: i32) -> (i32, i32) {
    %c0_i32 = arith.constant 0 : i32
    %c0_i32_0 = arith.constant 0 : i32
    %c0_i32_1 = arith.constant 0 : i32
    return %c0_i32, %c0_i32_0 : i32, i32
  }
  func.func @transform_4(%arg0: i32, %arg1: i32) -> (i32, i32) {
    %c0_i32 = arith.constant 0 : i32
    %c0_i32_0 = arith.constant 0 : i32
    %c0_i32_1 = arith.constant 0 : i32
    return %c0_i32, %c0_i32_0 : i32, i32
  }
  func.func @transform_5(%arg0: i32, %arg1: i32) -> (i32, i32) {
    %c0_i32 = arith.constant 0 : i32
    %c0_i32_0 = arith.constant 0 : i32
    %c0_i32_1 = arith.constant 0 : i32
    return %c0_i32, %c0_i32_0 : i32, i32
  }
  func.func @transform_6(%arg0: i32, %arg1: i32) -> (i32, i32) {
    %c0_i32 = arith.constant 0 : i32
    %c0_i32_0 = arith.constant 0 : i32
    %c0_i32_1 = arith.constant 0 : i32
    return %c0_i32, %c0_i32_0 : i32, i32
  }
  func.func @transform_7(%arg0: i32, %arg1: i32) -> (i32, i32, i32) {
    %c0_i32 = arith.constant 0 : i32
    %c0_i32_0 = arith.constant 0 : i32
    %c0_i32_1 = arith.constant 0 : i32
    return %arg0, %c0_i32, %c0_i32_0 : i32, i32, i32
  }
  func.func @transform_8(%arg0: i32, %arg1: i32) -> (i32, i32, i32) {
    %c0_i32 = arith.constant 0 : i32
    %c0_i32_0 = arith.constant 0 : i32
    %c0_i32_1 = arith.constant 0 : i32
    return %arg0, %c0_i32, %c0_i32_0 : i32, i32, i32
  }
}

</mosaic_0001>

<bundles_post_ra>
// kernel: tpu_custom_call.1
= control target key start
LH: loop header
LB: loop body
LE: loop exit
PB: predicated region body
PF: predicated region fallthrough
CT: control target
= control target key end

     0   :  { %s1671_s0 = inlined_call_operand.hbm [shape: f32[2,4,256], index: 0, kind: input, shape index: {}]   ;;  %s1672_s1 = inlined_call_operand.hbm [shape: f32[4,3], index: 1, kind: input, shape index: {}]   ;;  %s1673_s2 = inlined_call_operand.vmem [shape: f32[1,3], index: 2, kind: input, shape index: {}]   ;;  %s1674_s3 = inlined_call_operand.vmem [shape: f32[3,3], index: 3, kind: input, shape index: {}]   ;;  %s1675_s4 = inlined_call_operand.hbm [shape: f32[1,3], index: 4, kind: input, shape index: {}]   ;;  %s1676_s5 = inlined_call_operand.vmem [shape: f32[3,32], index: 5, kind: input, shape index: {}]   ;;  %s1677_s6 = inlined_call_operand.hbm [shape: f32[3,8], index: 6, kind: input, shape index: {}]   ;;  %s1678_s7 = inlined_call_operand.hbm [shape: f32[2,1,32], index: 7, kind: output, shape index: {0}]   ;;  %s1679_s8 = inlined_call_operand.hbm [shape: f32[2,1,8], index: 8, kind: output, shape index: {1}]  }
   0x1   :  { %1685 = sst [smem:[#allocation20_spill]] %s1672_s1 }
   0x2   :  { %1686 = sst [smem:[#allocation21_spill]] %s1675_s4 }
   0x3   :  { %1687 = sst [smem:[#allocation22_spill]] %s1677_s6 }
   0x4   :  { %14 = vsyncpa [#allocation4], 0 }
   0x5   :  { %16 = vsyncpa [#allocation4 + $0x1], 0 }
   0x6   :  { %17 = vsyncpa [#allocation7], 0 }
   0x7   :  { %18 = vsyncpa [#allocation10], 0 }
   0x8   :  { %19 = vsyncpa [#allocation5], 0 }
   0x9   :  { %21 = vsyncpa [#allocation5 + $0x1], 0 }
   0xa   :  { %22 = vsyncpa [#allocation13], 0 }
   0xb   :  { %24 = vsyncpa [#allocation13 + $0x1], 0  ;;  %s1412_s27 = smov 0   ;;  %s1414_s28 = smov 0  }
   0xc   :  { %s1416_s29 = smov 0   ;;  %s1418_s30 = smov 0  }
   0xd   :  { %s1420_s9 = smov 0   ;;  %s1422_s10 = smov 0  }
   0xe LB: > { %s967_s11 = sadd.s32 4294967295, %s1355_s10   ;;  %s968_s12 = sadd.s32 4294967294, %s1355_s10   ;;  %s1355_s10 = sphi %s1422_s10, %s30_s10   ;;  %s1351_s9 = sphi %s1420_s9, %s1710_s9   ;;  %s1347_s30 = sphi %s1418_s30, %s1709_s30   ;;  %s1343_s29 = sphi %s1416_s29, %s1708_s29   ;;  %s1339_s28 = sphi %s1414_s28, %s1707_s28   ;;  %s1335_s27 = sphi %s1412_s27, %s1706_s27  }
   0xf   : > { %p64_p0 = scmp.ne.s32.totalorder %s1339_s28, %s1335_s27  ;;  %p1446_p1 = scmp.eq.s32.totalorder %s967_s11, 0 }
  0x10   : > { %p1450_p2 = scmp.eq.s32.totalorder %s967_s11, 1  ;;  %p220_p3 = scmp.eq.s32.totalorder %s968_s12, 1 }
  0x11   : > { %s1688_s13 = scalar_select %p1446_p1, 1, 0 }
  0x12   : > { %p1456_p4 = por %p1446_p1, %p64_p0  ;;  %p969_p5 = scmp.ge.s32.totalorder %s1355_s10, 1 }
  0x13   : > { %p1461_p6 = por %p220_p3, %p64_p0  ;;  %p253_p7 = scmp.lt.s32.totalorder %s1355_s10, 3 }
  0x14   : > { %s1690_s15 = scalar_select %p1456_p4, 1, 0 }
  0x15   : > { %s1691_s16 = scalar_select %p1461_p6, 1, 0 }
  0x16   : > { %p1466_p8 = pnand %p969_p5, %p253_p7  ;;  %s1357_s18 = smov [#allocation6]  }
  0x17   : > { %s266_s19 = sshll.u32 %s1357_s18, 4  ;;  %s1358_s20 = smov [#allocation8]   ;;  %s267_s19 = int_to_ptr.vmem [resolvable:$true] %s266_s19 }
  0x18   : > { %s1692_s17 = scalar_select %p1466_p8, 1, 0 }
  0x19   : > { %p1041_p10 = pneg %p1466_p8  ;;  %s283_s21 = sshll.u32 %s1358_s20, 4  ;;  %s284_s21 = int_to_ptr.vmem [resolvable:$true] %s283_s21 }
  0x1a   : > { %s1359_s23 = smov [#allocation9]   ;;  %s1142_s25 = scalar_lea.vmem %s267_s19, 64 }
  0x1b   : > { %p1475_p11 = pnand %p1041_p10, %p1446_p1  ;;  %s297_s24 = sshll.u32 %s1359_s23, 4  ;;  %s1479_s24 = int_to_ptr.vmem [resolvable:$true] %s297_s24 }
  0x1c   : > { %p1143_p13 = scmp.ne.s32.totalorder %s267_s19, %s1142_s25  ;;  %p1150_p5 = scmp.lt.s32.totalorder %s267_s19, %s267_s19 }
  0x1d   : > { %p1133_p12 = pneg %p1475_p11  ;;  %p1151_p7 = scmp.lt.s32.totalorder %s1142_s25, %s1142_s25 }
  0x1f   : > { %p1145_p0 = pnand %p1143_p13, %p1133_p12  ;;  %p1152_p10 = por %p1151_p7, %p1150_p5 }
  0x21   : > { %p1146_p3 = pneg %p1145_p0 }
  0x23   : > { %p1153_p9 = pnand %p1152_p10, %p1146_p3 }
  0x25   : > { %1156 = shalt.err (!%p1153_p9)
}
  0x26   : > { %s1694_s1 = sld [smem:[#allocation20_spill]]  ;;  %s1168_s12 = scalar_lea.vmem %s284_s21, 16 }
  0x27   : > { %p1169_p6 = scmp.ne.s32.totalorder %s284_s21, %s1168_s12  ;;  %s1175_s18 = scalar_lea.vmem %s284_s21, 32 }
  0x28   : > { %p1176_p13 = scmp.lt.s32.totalorder %s284_s21, %s284_s21  ;;  %p1177_p0 = scmp.lt.s32.totalorder %s1175_s18, %s1168_s12 }
  0x29   : > { %p1171_p1 = pnand %p1169_p6, %p1133_p12 }
  0x2a   : > { %p1178_p8 = por %p1177_p0, %p1176_p13 }
  0x2b   : > { %p1172_p4 = pneg %p1171_p1 }
  0x2c   : > { %1044 = dma.hbm_to_vmem [thread:$0]  (!%p1475_p11), %s1694_s1, 64, %s267_s19, [#allocation7]  }
  0x2d   : > { %p1179_p5 = pnand %p1178_p8, %p1172_p4 }
  0x2f   : > { %1182 = shalt.err (!%p1179_p5)
}
  0x30   : > { %s1695_s4 = sld [smem:[#allocation21_spill]]  ;;  %s1194_s19 = scalar_lea.vmem %s1479_s24, 64 }
  0x31   : > { %p1195_p9 = scmp.ne.s32.totalorder %s1479_s24, %s1194_s19  ;;  %p1202_p3 = scmp.lt.s32.totalorder %s1479_s24, %s1479_s24 }
  0x32   : > { %p1203_p4 = scmp.lt.s32.totalorder %s1194_s19, %s1194_s19 }
  0x33   : > { %p1197_p1 = pnand %p1195_p9, %p1133_p12 }
  0x34   : > { %p1204_p8 = por %p1203_p4, %p1202_p3 }
  0x35   : > { %p1198_p6 = pneg %p1197_p1 }
  0x36   : > { %1047 = dma.hbm_to_vmem [thread:$0]  (!%p1475_p11), %s1695_s4, 16, %s284_s21, [#allocation7]  }
  0x37   : > { %p1205_p7 = pnand %p1204_p8, %p1198_p6 }
  0x39   : > { %1208 = shalt.err (!%p1205_p7)
}
  0x3a   : > { %s1696_s6 = sld [smem:[#allocation22_spill]]  ;;  %s51_s21 = sadd.s32 1, %s1343_s29 }
  0x3b   : > { %s42_s11 = sadd.s32 1, %s1351_s9  ;;  %p58_p12 = scmp.ne.s32.totalorder %s1343_s29, %s1339_s28 }
  0x3c   : > { %p44_p10 = scmp.ge.s32.totalorder %s42_s11, 2  ;;  %p59_p13 = scmp.eq.s32.totalorder %s1355_s10, 0 }
  0x3d   : > { %p1519_p0 = por %p1450_p2, %p58_p12  ;;  %p1065_p5 = scmp.lt.s32.totalorder %s1355_s10, 2 }
  0x3e   : > { %s1712_s11 = smov (%p44_p10, %s42_s11), 0  ;;  %p60_p9 = por %p59_p13, %p58_p12 }
  0x3f   : > { %1698 = sst [smem:[#allocation19_spill]] %s1712_s11  ;;  %s308_s12 = sand.u32 1, %s1343_s29  }
  0x40   : > { %1050 = dma.hbm_to_vmem [thread:$0]  (!%p1475_p11), %s1696_s6, 64, %s1479_s24, [#allocation10]  }
  0x41   : > { %s46_s18 = ssub.s32 %s1351_s9, %s1712_s11  ;;  %s974_s24 = sshll.u32 %s308_s12, 3 }
  0x42   : > { %p49_p1 = scmp.eq.s32.totalorder %s46_s18, 0  ;;  %s994_s20 = sshll.u32 %s1351_s9, 7 }
  0x43   : > { %s320_s14 = scalar_lea.hbm %s1671_s0, %s994_s20  ;;  %s312_s26 = scalar_lea.vmem [#allocation3], %s974_s24 }
  0x44   : > { %s1531_s23 = scalar_select %p49_p1, %s1343_s29, %s51_s21  }
  0x45   : > { %s322_s1 = sshll.u32 %s312_s26, 4  ;;  %p1538_p2 = pnand %p1065_p5, %p60_p9  ;;  %s323_s1 = int_to_ptr.vmem [resolvable:$true] %s322_s1 }
  0x46   : > { %s309_s6 = scalar_lea.sflag [#allocation4], %s308_s12  ;;  %s1222_s18 = scalar_lea.vmem %s323_s1, 128 }
  0x47   : > { %p1211_p11 = pneg %p1538_p2  ;;  %p1223_p6 = scmp.ne.s32.totalorder %s323_s1, %s1222_s18 }
  0x48   : > { %s1360_s21 = smov [#allocation3]  }
  0x49   : > { %p1225_p3 = pnand %p1223_p6, %p1211_p11  ;;  %s1227_s11 = sshll.u32 %s1360_s21, 4  ;;  %s1228_s11 = int_to_ptr.vmem [resolvable:$false] %s1227_s11 }
  0x4a   : > { %s1229_s20 = scalar_lea.vmem %s1228_s11, 256  ;;  %p1230_p8 = scmp.lt.s32.totalorder %s323_s1, %s1228_s11 }
  0x4b   : > { %p1226_p4 = pneg %p1225_p3  ;;  %p1231_p7 = scmp.lt.s32.totalorder %s1229_s20, %s1222_s18 }
  0x4d   : > { %p1232_p12 = por %p1231_p7, %p1230_p8 }
  0x4f   : > { %p1233_p10 = pnand %p1232_p12, %p1226_p4 }
  0x51   : > { %1236 = shalt.err (!%p1233_p10)
}
  0x52   : > { %1054 = dma.hbm_to_vmem [thread:$0]  (!%p1538_p2), %s320_s14, 128, %s323_s1, %s309_s6  }
  0x53   : > { %p1700_p13 = scmp.ne.s32.totalorder %s1692_s17, 0 }
  0x54   : > { %s1549_s12 = sand.u32 (!%p1700_p13), 1, %s1339_s28   ;;  %p1701_p5 = scmp.ne.s32.totalorder (!%p1700_p13), %s1690_s15, 0 }
  0x55   : > { %331 = sbr.rel (%p1700_p13) target bundleno = 1325 (0x52d), region = 48  ;;  %s978_s24 = sshll.u32 (!%p1700_p13), %s1549_s12, 3 }
  0x56   : > { %s334_s19 = scalar_lea.sflag (!%p1700_p13), [#allocation4], %s1549_s12  ;;  %s337_s25 = scalar_lea.vmem (!%p1700_p13), [#allocation3], %s978_s24 }
  0x5a   : > { %1314 = dma.done.wait (%p1701_p5), %s334_s19, 128  }
  0x5b   : > { %1316 = vsyncadd (%p1701_p5), %s334_s19, 4294967168  ;;  %p1702_p9 = scmp.ne.s32.totalorder %s1688_s13, 0 }
  0x5d   : > { %1318 = dma.done.wait (%p1702_p9), [#allocation7], 80  }
  0x5e   : > { %1320 = vsyncadd (%p1702_p9), [#allocation7], 4294967216 }
  0x5f   : > { %1322 = dma.done.wait (%p1702_p9), [#allocation10], 64  }
  0x60   : > { %1324 = vsyncadd (%p1702_p9), [#allocation10], 4294967232  ;;  %vm397_vm0 = vcmask 1043456   ;;  %v392_v0 = vld [vmem:[%s337_s25] sm:$0xff]  ;;  %v1361_v5 = vmov 0   ;;  %v404_v6 = vlaneseq  ;;  %vm390_vm1 = vcmask 24576  }
  0x61   : > { %v395_v1 = vcombine.high %v392_v0, %v392_v0  ;;  %v398_v2 = vsel %vm397_vm0, %v392_v0, 0.0  ;;  %1125 = vset.pattern.permute.xlu0 %v1361_v5  ;;  %v1362_v9 = vmov 0.0   ;;  %v1363_v11 = vmov 1966171168   ;;  %v476_v30 = vld [vmem:[#allocation6] sm:$0xf] }
  0x62   : > { %v405_v7 = vshrl.u32 %v404_v6, 7  ;;  %v448_v8 = vand.u32 127, %v404_v6  ;;  %391 = vst.msk [vmem:[#allocation2] sm:$0x1] %vm390_vm1, %v1362_v9  ;;  %1003 = vmatprep.subr.mxu0 %v1362_v9  ;;  %1008 = vmatprep.subr.mxu1 %v1362_v9  ;;  %v423_v12 = vunpack.c.l.s4 %v1363_v11  ;;  %vm1364_vm2 = vmmov 0   ;;  %s990_s11 = sshll.u32 %s1347_s30, 4 }
  0x63   : > { %v399_v3 = vsel %vm397_vm0, %v395_v1, 0.0  ;;  %1004 = vmatpush3.msk.msra.mxu0 %vm397_vm0, %v476_v30  ;;  %1005 = vmatprep.mubr.msk.f32.mxu0 %vm1364_vm2, %v1362_v9  ;;  %vm478_vm3 = vcmask 31744   ;;  %v556_v39 = vld [vmem:[%s1674_s3] sm:$0x7]  ;;  %vm562_vm4 = vcmask 1042432   ;;  %vm558_vm5 = vcmask 23552   ;;  %s1595_s19 = scalar_lea.hbm %s1678_s7, %s990_s11  ;;  %s1602_s1 = scalar_lea.hbm %s1679_s8, %s990_s11 }
  0x64   : > { %v400_v4 = vadd.f32 %v399_v3, %v398_v2  ;;  %v451_v10 = vsub.s32 %v448_v8, %v405_v7  ;;  %v424_v13 = vunpack.c.0.s8 %v423_v12  ;;  %v406_v14 = vsub.s32 0, %v405_v7  ;;  %1010 = vmatprep.mubr.msk.f32.mxu1 %vm1364_vm2, %v1362_v9  ;;  %1013 = vmatprep.subr.mxu0 %v1362_v9  ;;  %v477_v40 = vld [vmem:[%s1673_s2] sm:$0x1]  ;;  %v557_v45 = vld [vmem:[#allocation8] sm:$0x1]  ;;  %s378_s14 = scalar_lea.vmem [#allocation11], %s1549_s12 }
  0x65   : > { %v410_v15 = vsub.s32 1, %v405_v7  ;;  %v414_v16 = vsub.s32 2, %v405_v7  ;;  %v418_v17 = vsub.s32 3, %v405_v7  ;;  %1009 = vmatpush3.msk.msra.mxu1 %vm562_vm4, %v556_v39  ;;  %vm636_vm6 = vcmask 16384   ;;  %v648_v55 = vld [vmem:[%s1676_s5] sm:$0x7] }
  0x66   : > { %401 = vadd.xlane.f32.xlu0 %v400_v4  ;;  %v427_v19 = vsub.s32 %v424_v13, %v405_v7  ;;  %1018 = vmatprep.subr.mxu1 %v1362_v9  ;;  %v727_v56 = vld [vmem:[#allocation9] sm:$0x7]  ;;  %s820_s26 = sshll.u32 %s378_s14, 4  ;;  %s384_s18 = scalar_lea.vmem [#allocation12], %s1549_s12  ;;  %vm725_vm7 = vcmask 253952   ;;  %vm801_vm8 = vcmask 57344   ;;  %s1597_s26 = int_to_ptr.vmem [resolvable:$true] %s820_s26 }
  0x67   : > { %s833_s21 = sshll.u32 %s384_s18, 4  ;;  %s804_s4 = scalar_lea.sflag [#allocation5], %s1549_s12  ;;  %s1604_s21 = int_to_ptr.vmem [resolvable:$true] %s833_s21 }
  0x68   : > { %s1237_s6 = scalar_lea.vmem %s1597_s26, 16  ;;  %s1365_s13 = smov [#allocation11]  }
  0x69   : > { %v393_v34 = vld [vmem:[#allocation2] sm:$0x1]  ;;  %p1238_p1 = scmp.ne.s32.totalorder %s1597_s26, %s1237_s6  ;;  %s1241_s15 = sshll.u32 %s1365_s13, 4  ;;  %s1242_s15 = int_to_ptr.vmem [resolvable:$false] %s1241_s15 }
  0x6a   : > { %s1243_s17 = scalar_lea.vmem %s1242_s15, 32  ;;  %p1244_p6 = scmp.lt.s32.totalorder %s1597_s26, %s1242_s15 }
  0x6b   : > { %p1239_p2 = pnand %p1238_p1, %p1519_p0  ;;  %p1245_p3 = scmp.lt.s32.totalorder %s1243_s17, %s1237_s6 }
  0x6d   : > { %p1240_p11 = pneg %p1239_p2  ;;  %p1246_p4 = por %p1245_p3, %p1244_p6 }
  0x6f   : > { %p1247_p8 = pnand %p1246_p4, %p1240_p11 }
  0xef   : > { %v402_v18 = vpop.xlane.xlu0 %401 }
  0xf0   : > { %v407_v20 = vrot.slane %v402_v18, %v406_v14  ;;  %v411_v21 = vrot.slane %v402_v18, %v410_v15  ;;  %v415_v22 = vrot.slane %v402_v18, %v414_v16  ;;  %v419_v23 = vrot.slane %v402_v18, %v418_v17 }
  0xf2   : > { %v420_v24 = vcombine.low %v407_v20, %v411_v21  ;;  %v421_v25 = vcombine.low %v415_v22, %v419_v23 }
  0xf4   : > { %v428_v26 = vrot.slane %v420_v24, %v427_v19  ;;  %v435_v27 = vrot.slane %v421_v25, %v427_v19 }
  0xf6   : > { %v436_v28 = vcombine.low %v428_v26, %v435_v27 }
  0xf8   : > { %v443_v29 = vrot.slane %v436_v28, %v427_v19 }
  0xfa   : > { %445 = vperm.xlu0 %1125, %v443_v29  }
 0x175   : > { %v446_v31 = vpop.permute.xlu0 %445 }
 0x176   : > { %v452_v32 = vrot.slane %v446_v31, %v451_v10 }
 0x178   : > { %v459_v33 = vrot.slane %v452_v32, %v427_v19 }
 0x17a   : > { %v466_v35 = vrot.slane %v459_v33, %v427_v19 }
 0x17c   : > { %v468_v36 = vadd.f32 %v466_v35, %v393_v34 }
 0x17e   : > { %470 = vst.msk [vmem:[#allocation2] sm:$0x1] %vm390_vm1, %v468_v36 }
 0x185   : > { %v474_v37 = vld [vmem:[#allocation2] sm:$0x1] }
 0x186   : > { %v475_v38 = vmul.f32 0.00390625, %v474_v37 }
 0x188   : > { %1006 = vmatmul.mubr.msk.f32.vlgmr.msra.gmra.mxu0 %vm478_vm3, %v475_v38 }
 0x189   : > { %1015 = vmatprep.mubr.msk.f32.mxu0 %vm1364_vm2, %v1362_v9  ;;  %1014 = vmatpush3.msk.msra.mxu0 %vm562_vm4, %v648_v55 }
 0x248   : > { %v551_v41 = vpop.f32.mrf.mxu0 }
 0x249   : > { %v552_v42 = vadd.f32 %v551_v41, %v477_v40 }
 0x24a   : > { %v1007_v43 = vpop.f32.mrf.mxu0 }
 0x24b   : > { %v555_v44 = vmax.f32 %v552_v42, 0.0 }
 0x24d   : > { %1011 = vmatmul.mubr.msk.f32.vlgmr.msra.gmra.mxu1 %vm558_vm5, %v555_v44 }
 0x24e   : > { %1020 = vmatprep.mubr.msk.f32.mxu1 %vm1364_vm2, %v1362_v9  ;;  %1019 = vmatpush3.msk.msra.mxu1 %vm562_vm4, %v727_v56 }
 0x30d   : > { %v632_v46 = vpop.f32.mrf.mxu1 }
 0x30e   : > { %v633_v47 = vadd.f32 %v632_v46, %v557_v45 }
 0x30f   : > { %v1012_v48 = vpop.f32.mrf.mxu1 }
 0x310   : > { %v637_v49 = vsel %vm636_vm6, %v633_v47, -inf }
 0x311   : > { %638 = vmax.xlane.f32.xlu1 %v637_v49 }
 0x39a   : > { %v639_v50 = vpop.xlane.xlu1 %638 }
 0x39b   : > { %v640_v51 = vsub.f32 %v633_v47, %v639_v50 }
 0x39d   : > { %v641_v52 = vmul.f32 1.442695, %v640_v51 }
 0x39f   : > { %1127 = vpow2.f32 %v641_v52 }
 0x3ac   : > { %v1128_v53 = vpop.eup %1127 }
 0x3ad   : > { %v643_v54 = vsel %vm636_vm6, %v1128_v53, 0.0 }
 0x3ae   : > { %644 = vadd.xlane.f32.xlu1 %v643_v54 }
 0x437   : > { %v645_v57 = vpop.xlane.xlu1 %644 }
 0x438   : > { %1129 = vrcp.f32 %v645_v57 }
 0x445   : > { %v1130_v58 = vpop.eup %1129 }
 0x446   : > { %v647_v59 = vmul.f32 %v1130_v58, %v1128_v53 }
 0x448   : > { %1016 = vmatmul.mubr.msk.f32.vlgmr.msra.gmra.mxu0 %vm558_vm5, %v647_v59  ;;  %1021 = vmatmul.mubr.msk.f32.vlgmr.msra.gmra.mxu1 %vm558_vm5, %v647_v59 }
 0x508   : > { %v721_v60 = vpop.f32.mrf.mxu0  ;;  %v797_v61 = vpop.f32.mrf.mxu1 }
 0x509   : > { %726 = vst.msk [vmem:[%s378_s14] sm:$0x1] %vm725_vm7, %v721_v60 }
 0x50a   : > { %802 = vst.msk [vmem:[%s384_s18] sm:$0x1] %vm801_vm8, %v797_v61  ;;  %v1017_v62 = vpop.f32.mrf.mxu0  ;;  %v1022_v63 = vpop.f32.mrf.mxu1 }
 0x50b   : > { %1250 = shalt.err (!%p1247_p8)
}
 0x50c   : > { %s1251_s11 = scalar_lea.hbm %s1595_s19, 16  ;;  %s1255_s20 = scalar_lea.hbm %s1678_s7, 32 }
 0x50d   : > { %p1252_p7 = scmp.ne.s32.totalorder %s1595_s19, %s1251_s11  ;;  %p1256_p13 = scmp.lt.s32.totalorder %s1595_s19, %s1678_s7 }
 0x50e   : > { %p1257_p5 = scmp.lt.s32.totalorder %s1255_s20, %s1251_s11 }
 0x50f   : > { %p1253_p12 = pnand %p1252_p7, %p1519_p0 }
 0x510   : > { %p1258_p9 = por %p1257_p5, %p1256_p13 }
 0x511   : > { %p1254_p10 = pneg %p1253_p12 }
 0x513   : > { %p1259_p1 = pnand %p1258_p9, %p1254_p10 }
 0x515   : > { %1262 = shalt.err (!%p1259_p1)
}
 0x516   : > { %1037 = dma.vmem_to_hbm [thread:$0]  (%p1519_p0), %s1597_s26, 16, %s1595_s19, %s804_s4  }
 0x517   : > { %s808_s25 = scalar_lea.sflag [#allocation13], %s1549_s12  ;;  %s1263_s6 = scalar_lea.vmem %s1604_s21, 16 }
 0x518   : > { %p1264_p2 = scmp.ne.s32.totalorder %s1604_s21, %s1263_s6  ;;  %s1366_s13 = smov [#allocation12]  }
 0x519   : > { %s1267_s15 = sshll.u32 %s1366_s13, 4  ;;  %s1268_s15 = int_to_ptr.vmem [resolvable:$false] %s1267_s15 }
 0x51a   : > { %p1265_p11 = pnand %p1264_p2, %p1519_p0  ;;  %s1269_s17 = scalar_lea.vmem %s1268_s15, 32 }
 0x51b   : > { %p1270_p3 = scmp.lt.s32.totalorder %s1604_s21, %s1268_s15  ;;  %p1271_p4 = scmp.lt.s32.totalorder %s1269_s17, %s1263_s6 }
 0x51c   : > { %p1266_p6 = pneg %p1265_p11 }
 0x51d   : > { %p1272_p8 = por %p1271_p4, %p1270_p3 }
 0x51f   : > { %p1273_p7 = pnand %p1272_p8, %p1266_p6 }
 0x521   : > { %1276 = shalt.err (!%p1273_p7)
}
 0x522   : > { %s1277_s26 = scalar_lea.hbm %s1602_s1, 16  ;;  %s1281_s4 = scalar_lea.hbm %s1679_s8, 32 }
 0x523   : > { %p1278_p12 = scmp.ne.s32.totalorder %s1602_s1, %s1277_s26  ;;  %p1282_p5 = scmp.lt.s32.totalorder %s1602_s1, %s1679_s8 }
 0x524   : > { %p1283_p9 = scmp.lt.s32.totalorder %s1281_s4, %s1277_s26 }
 0x525   : > { %p1279_p10 = pnand %p1278_p12, %p1519_p0 }
 0x526   : > { %p1284_p1 = por %p1283_p9, %p1282_p5 }
 0x527   : > { %p1280_p13 = pneg %p1279_p10 }
 0x529   : > { %p1285_p2 = pnand %p1284_p1, %p1280_p13 }
 0x52b   : > { %1288 = shalt.err (!%p1285_p2)
}
 0x52c   : > { %1038 = dma.vmem_to_hbm [thread:$0]  (%p1519_p0), %s1604_s21, 16, %s1602_s1, %s808_s25  }
 0x52d PF: > { %s845_s18 = sand.u32 1, %s1335_s27   ;;  %p1703_p11 = scmp.ne.s32.totalorder %s1691_s16, 0 }
 0x52e   : > { %p1704_p6 = scmp.ge.s32.totalorder %s1355_s10, 2  ;;  %s846_s20 = scalar_lea.sflag [#allocation5], %s845_s18 }
 0x530   : > { %p1056_p3 = pnand %p1704_p6, %p1703_p11 }
 0x532   : > { %p1057_p4 = pneg %p1056_p3 }
 0x534   : > { %1326 = dma.done.wait (%p1057_p4), %s846_s20, 16  }
 0x535   : > { %1328 = vsyncadd (%p1057_p4), %s846_s20, 4294967280  ;;  %s854_s24 = scalar_lea.sflag [#allocation13], %s845_s18 }
 0x536   : > { %1330 = dma.done.wait (%p1057_p4), %s854_s24, 16  }
 0x537   : > { %1332 = vsyncadd (%p1057_p4), %s854_s24, 4294967280  ;;  %s30_s10 = sadd.s32 1, %s1355_s10   ;;  %s1705_s22 = sld [smem:[#allocation19_spill]] }
 0x538   : > { %p27_p8 = scmp.ge.s32.totalorder %s30_s10, 4   ;;  %s1706_s27 = smov %s1339_s28 }
 0x539   : > { %s1707_s28 = smov %s1343_s29  ;;  %s1708_s29 = smov %s1531_s23 }
 0x53a   : > { %s1709_s30 = smov %s1351_s9  ;;  %29 = sbr.rel (!%p27_p8) target bundleno = 14 (0xe), region = 130 }
 0x53d   : > { %s1710_s9 = smov %s1705_s22 }
 0x53f   :  { %858 = vsyncpa [#allocation4], 1 }
 0x540   :  { %860 = vsyncpa [#allocation4 + $0x1], 1 }
 0x541   :  { %861 = vsyncpa [#allocation7], 1 }
 0x542   :  { %862 = vsyncpa [#allocation10], 1 }
 0x543   :  { %863 = vsyncpa [#allocation5], 1 }
 0x544   :  { %865 = vsyncpa [#allocation5 + $0x1], 1 }
 0x545   :  { %866 = vsyncpa [#allocation13], 1 }
 0x546   :  { %868 = vsyncpa [#allocation13 + $0x1], 1 }

</bundles_post_ra>
